<compile_context>
chip_gen: v7x
topology: tpu7x:2x2x1
jax: 0.10.0
libtpu: 0.0.40
codegen_flags: <defaults>
</compile_context>

<pallas_src>
import jax
import jax.numpy as jnp
from jax.experimental import pallas as pl
from jax.experimental.pallas import tpu as pltpu


def _round_up(n, m):
    return ((n + m - 1) // m) * m


def predict_layer_kernel(x_ref, w1_ref, b1_ref, w2_ref, b2_ref, o_ref):
    # hidden = relu(x @ W1 + b1)          (TB, 8), f32 accumulation on the MXU
    h = jnp.dot(x_ref[...], w1_ref[...], preferred_element_type=jnp.float32)
    h = jnp.maximum(h + b1_ref[...], 0.0)
    # Dropout(p=0) is identity -> elided.
    # Second layer (TB, 8) @ (8, 1) done as VPU multiply + lane reduction
    # (avoids an N=1 MXU matmul in the epilogue).  w2 is stored as a (1, 8) row.
    out = jnp.sum(h * w2_ref[...], axis=-1)             # (TB,)
    out = out + b2_ref[0, 0]                             # scalar bias from SMEM
    # Lane-dense store: one (1, TB) row per grid step (unmasked vst).
    o_ref[...] = out.reshape(1, -1).astype(o_ref.dtype)


def predict_layer(x, w1, b1, w2_row, b2, *, block_rows=512):
    """x: (B, D) f32; w1: (D, 8); b1: (1, 8); w2_row: (1, 8); b2: (1, 1).

    Returns (B, 1) = relu(x @ w1 + b1) @ w2_row.T + b2.
    """
    B, D = x.shape

    # Batch tile: whole (padded) batch if it fits in one block, otherwise a
    # multiple-of-128 tile so the lane-dense (1, TB) output blocks stay aligned.
    if B <= block_rows:
        tb = _round_up(B, 8)
    else:
        tb = _round_up(block_rows, 128)
    bp = _round_up(B, tb)
    if bp != B:
        x = jnp.pad(x, ((0, bp - B), (0, 0)))
    num_tiles = bp // tb

    cost = pl.CostEstimate(
        flops=2 * B * D * 8 + 2 * B * 8,
        bytes_accessed=4 * (bp * D + D * 8 + 8 + 8 + 1 + bp),
        transcendentals=0,
    )

    out_rows = pl.pallas_call(
        predict_layer_kernel,
        out_shape=jax.ShapeDtypeStruct((num_tiles, tb), x.dtype),
        grid=(num_tiles,),
        in_specs=[
            pl.BlockSpec((tb, D), lambda i: (i, 0)),             # x: batch-tiled
            pl.BlockSpec((D, 8), lambda i: (0, 0)),              # W1: resident
            pl.BlockSpec((1, 8), lambda i: (0, 0)),              # b1: resident
            pl.BlockSpec((1, 8), lambda i: (0, 0)),              # W2 row: resident
            pl.BlockSpec(memory_space=pltpu.MemorySpace.SMEM),   # b2 scalar
        ],
        out_specs=pl.BlockSpec((1, tb), lambda i: (i, 0)),       # lane-dense rows
        compiler_params=pltpu.CompilerParams(
            dimension_semantics=("parallel",),
        ),
        cost_estimate=cost,
    )(x, w1, b1, w2_row, b2)

    # (num_tiles, TB) row-major == rows 0..bp-1; reshape back to a column.
    return out_rows.reshape(bp, 1)[:B]


def make_params(key, embedding_dim):
    """Deterministic synthetic parameters (nn.Linear-style init).

    PyTorch stores Linear weights as (out_features, in_features); we initialise
    in that convention and lay them out for the kernel: W1 transposed to
    (D, 8), W2 kept as a (1, 8) row (used by the VPU reduction), biases as
    2-D (1, 8) / (1, 1).
    """
    k1, k2, k3, k4 = jax.random.split(key, 4)
    bound1 = 1.0 / jnp.sqrt(jnp.float32(embedding_dim))
    w1_pt = jax.random.uniform(k1, (8, embedding_dim), jnp.float32, -bound1, bound1)
    b1_pt = jax.random.uniform(k2, (8,), jnp.float32, -bound1, bound1)
    bound2 = 1.0 / jnp.sqrt(jnp.float32(8))
    w2_pt = jax.random.uniform(k3, (1, 8), jnp.float32, -bound2, bound2)
    b2_pt = jax.random.uniform(k4, (1,), jnp.float32, -bound2, bound2)
    return (w1_pt.T, b1_pt.reshape(1, 8), w2_pt, b2_pt.reshape(1, 1))


if __name__ == "__main__":
    batch = 8
    embedding_dim = 32

    key = jax.random.PRNGKey(0)
    kx, kp = jax.random.split(key)
    x = jax.random.normal(kx, (batch, embedding_dim), jnp.float32)
    w1, b1, w2_row, b2 = make_params(kp, embedding_dim)

    out = predict_layer(x, w1, b1, w2_row, b2)
    out = jax.block_until_ready(out)

    # Pure-JAX reference (same math as the PyTorch forward).
    ref = jnp.maximum(x @ w1 + b1, 0.0) @ w2_row.T + b2
    assert out.shape == (batch, 1)
    assert jnp.allclose(out, ref, atol=1e-5, rtol=1e-5)

    print("KERNEL_OK")
</pallas_src>

<mosaic_0001>
module attributes {stable_mosaic.version = 11 : i64} {
  func.func @predict_layer_kernel(%arg0: i32, %arg1: memref<8x32xf32, #tpu.memory_space<vmem>>, %arg2: memref<32x8xf32, #tpu.memory_space<vmem>>, %arg3: memref<1x8xf32, #tpu.memory_space<vmem>>, %arg4: memref<1x8xf32, #tpu.memory_space<vmem>>, %arg5: memref<1x1xf32, #tpu.memory_space<smem>>, %arg6: memref<1x8xf32, #tpu.memory_space<vmem>>) attributes {dimension_semantics = [#tpu.dimension_semantics<parallel>], iteration_bounds = array<i64: 1>, scalar_prefetch = 0 : i64, scratch_operands = 0 : i64, tpu.core_type = #tpu.core_type<tc>, window_params = [{transform_indices = @transform_0, window_bounds = array<i64: 8, 32>}, {pipeline_mode = #tpu.pipeline_mode<synchronous>, transform_indices = @transform_1, window_bounds = array<i64: 32, 8>}, {pipeline_mode = #tpu.pipeline_mode<synchronous>, transform_indices = @transform_2, window_bounds = array<i64: 1, 8>}, {pipeline_mode = #tpu.pipeline_mode<synchronous>, transform_indices = @transform_3, window_bounds = array<i64: 1, 8>}, {transform_indices = @transform_4, window_bounds = array<i64: 1, 1>}, {transform_indices = @transform_5, window_bounds = array<i64: 1, 8>}]} {
    %c0 = arith.constant 0 : index
    %c0_0 = arith.constant 0 : index
    %0 = vector.load %arg1[%c0, %c0_0] : memref<8x32xf32, #tpu.memory_space<vmem>>, vector<8x32xf32>
    %c0_1 = arith.constant 0 : index
    %c0_2 = arith.constant 0 : index
    %1 = vector.load %arg2[%c0_1, %c0_2] : memref<32x8xf32, #tpu.memory_space<vmem>>, vector<32x8xf32>
    %cst = arith.constant dense<0.000000e+00> : vector<8x8xf32>
    %2 = tpu.matmul %0, %1, %cst {dimension_numbers = #tpu.dot_dimension_numbers<[1], [0], [0], [1], [0, 0, 1, 1], [], []>} : vector<8x32xf32>, vector<32x8xf32>, vector<8x8xf32> -> vector<8x8xf32>
    %c0_3 = arith.constant 0 : index
    %c0_4 = arith.constant 0 : index
    %3 = vector.load %arg3[%c0_3, %c0_4] : memref<1x8xf32, #tpu.memory_space<vmem>>, vector<1x8xf32>
    %4 = vector.broadcast %3 : vector<1x8xf32> to vector<8x8xf32>
    %5 = arith.addf %2, %4 : vector<8x8xf32>
    %cst_5 = arith.constant 0.000000e+00 : f32
    %6 = vector.broadcast %cst_5 : f32 to vector<8x8xf32>
    %7 = arith.maximumf %5, %6 : vector<8x8xf32>
    %c0_6 = arith.constant 0 : index
    %c0_7 = arith.constant 0 : index
    %8 = vector.load %arg4[%c0_6, %c0_7] : memref<1x8xf32, #tpu.memory_space<vmem>>, vector<1x8xf32>
    %9 = vector.broadcast %8 : vector<1x8xf32> to vector<8x8xf32>
    %10 = arith.mulf %7, %9 : vector<8x8xf32>
    %cst_8 = arith.constant dense<0.000000e+00> : vector<8xf32>
    %11 = vector.multi_reduction <add>, %10, %cst_8 [1] : vector<8x8xf32> to vector<8xf32>
    %c0_9 = arith.constant 0 : index
    %c0_10 = arith.constant 0 : index
    %12 = memref.load %arg5[%c0_9, %c0_10] : memref<1x1xf32, #tpu.memory_space<smem>>
    %13 = vector.broadcast %12 : f32 to vector<8xf32>
    %14 = arith.addf %11, %13 : vector<8xf32>
    %15 = vector.shape_cast %14 : vector<8xf32> to vector<1x8xf32>
    %c0_11 = arith.constant 0 : index
    %c0_12 = arith.constant 0 : index
    %16 = vector.load %arg6[%c0_11, %c0_12] : memref<1x8xf32, #tpu.memory_space<vmem>>, vector<1x8xf32>
    tpu.vector_store %arg6[%c0_11, %c0_12], %15 {strides = array<i32>} : memref<1x8xf32, #tpu.memory_space<vmem>>, vector<1x8xf32>,
    return
  }
  func.func @transform_0(%arg0: i32) -> (i32, i32) {
    %c0_i32 = arith.constant 0 : i32
    %c0_i32_0 = arith.constant 0 : i32
    return %arg0, %c0_i32 : i32, i32
  }
  func.func @transform_1(%arg0: i32) -> (i32, i32) {
    %c0_i32 = arith.constant 0 : i32
    %c0_i32_0 = arith.constant 0 : i32
    %c0_i32_1 = arith.constant 0 : i32
    return %c0_i32, %c0_i32_0 : i32, i32
  }
  func.func @transform_2(%arg0: i32) -> (i32, i32) {
    %c0_i32 = arith.constant 0 : i32
    %c0_i32_0 = arith.constant 0 : i32
    %c0_i32_1 = arith.constant 0 : i32
    return %c0_i32, %c0_i32_0 : i32, i32
  }
  func.func @transform_3(%arg0: i32) -> (i32, i32) {
    %c0_i32 = arith.constant 0 : i32
    %c0_i32_0 = arith.constant 0 : i32
    %c0_i32_1 = arith.constant 0 : i32
    return %c0_i32, %c0_i32_0 : i32, i32
  }
  func.func @transform_4(%arg0: i32) -> (i32, i32) {
    %c0_i32 = arith.constant 0 : i32
    %c0_i32_0 = arith.constant 0 : i32
    %c0_i32_1 = arith.constant 0 : i32
    return %c0_i32, %c0_i32_0 : i32, i32
  }
  func.func @transform_5(%arg0: i32) -> (i32, i32) {
    %c0_i32 = arith.constant 0 : i32
    %c0_i32_0 = arith.constant 0 : i32
    return %arg0, %c0_i32 : i32, i32
  }
}

</mosaic_0001>

<bundles_post_ra>
// kernel: tpu_custom_call.1
= control target key start
LH: loop header
LB: loop body
LE: loop exit
PB: predicated region body
PF: predicated region fallthrough
CT: control target
= control target key end

     0   :  { %v201_v3 = vmov 0.0|0.0   ;;  %vm202_vm0 = vmmov 0   ;;  %v203_v6 = vmov 0.0   ;;  %s271_s0 = inlined_call_operand.vmem [shape: f32[8,32], index: 0, kind: input, shape index: {}]   ;;  %s272_s1 = inlined_call_operand.vmem [shape: f32[32,8], index: 1, kind: input, shape index: {}]   ;;  %s273_s2 = inlined_call_operand.vmem [shape: f32[1,8], index: 2, kind: input, shape index: {}]   ;;  %s274_s3 = inlined_call_operand.vmem [shape: f32[1,8], index: 3, kind: input, shape index: {}]   ;;  %s275_s4 = inlined_call_operand.<no memory space> [shape: f32[1,1], index: 4, kind: input, shape index: {}]   ;;  %s276_s5 = inlined_call_operand.hbm [shape: f32[1,8], index: 5, kind: output, shape index: {}]  }
   0x1   :  { %v23_v0 = vld [vmem:[%s272_s1] sm:$0xff]  ;;  %v24_v1 = vld [vmem:[%s272_s1 + $0x8] sm:$0xff]  ;;  %v25_v2 = vld [vmem:[%s272_s1 + $0x10] sm:$0xff]  ;;  %167 = vmatprep.subr.bf16.mxu0 %v201_v3  ;;  %164 = vmatprep.mubr.msk.f32.mxu0 %vm202_vm0, %v203_v6 }
   0x2   :  { %v168_v4 = vpack.c.bf16 %v24_v1, %v23_v0  ;;  %v26_v5 = vld [vmem:[%s272_s1 + $0x18] sm:$0xff] }
   0x3   :  { %11 = vsyncpa [#allocation4], 0  ;;  %v171_v7 = vpack.c.bf16 %v26_v5, %v25_v2  ;;  %v22_v8 = vld [vmem:[%s271_s0] sm:$0xff]  ;;  %vm34_vm1 = vcmask 261120   ;;  %vm117_vm2 = vcmask 64512   ;;  %v125_v17 = vlaneseq }
   0x4   :  { %169 = vmatpush3.bf16.msra.mxu0 %v168_v4  ;;  %v148_v9 = vld [vmem:[%s273_s2] ss:$0 sm:$0xff]  ;;  %v122_v20 = vstv %s275_s4  ;;  %s204_s2 = smov [#allocation3]   ;;  %vm132_vm3 = vcmask 57344  }
   0x5   :  { %170 = vmatprep.subr.bf16.mxu0 %v201_v3  ;;  %v150_v13 = vld [vmem:[%s274_s3] ss:$0 sm:$0xff]  ;;  %v126_v18 = vand.u32 127, %v125_v17  ;;  %v128_v19 = vshrl.u32 %v125_v17, 7  ;;  %s140_s7 = sshll.u32 %s204_s2, 4  ;;  %s141_s7 = int_to_ptr.vmem [resolvable:$true] %s140_s7 }
   0x6   :  { %s177_s3 = scalar_lea.vmem %s141_s7, 16  ;;  %s181_s8 = scalar_lea.vmem %s141_s7, 32 }
   0x7   :  { %v129_v21 = vsub.s32 %v126_v18, %v128_v19  ;;  %p178_p0 = scmp.ne.s32.totalorder %s141_s7, %s177_s3  ;;  %p182_p1 = scmp.lt.s32.totalorder %s141_s7, %s141_s7 }
   0x8   :  { %172 = vmatpush3.bf16.msra.mxu0 %v171_v7  ;;  %p183_p2 = scmp.lt.s32.totalorder %s181_s8, %s177_s3 }
   0xa   :  { %p184_p3 = por %p183_p2, %p182_p1 }
   0xb   :  { %165 = vmatmul.mubr.msk.f32.vlgmr.msra.gmra.mrb[0].mxu0 %vm34_vm1, %v22_v8 }
   0xc   :  { %p185_p4 = pnand %p184_p3, %p178_p0 }
  0xde   :  { %v104_v10 = vpop.f32.mrb[0].mxu0 }
  0xdf   :  { %v105_v11 = vadd.f32 %v148_v9, %v104_v10  ;;  %v166_v12 = vpop.f32.mrb[1].mxu0 }
  0xe1   :  { %v108_v14 = vmax.f32 %v105_v11, 0.0 }
  0xe3   :  { %v116_v15 = vmul.f32 %v150_v13, %v108_v14 }
  0xe5   :  { %v118_v16 = vsel %vm117_vm2, %v116_v15, 0.0 }
  0xe6   :  { %119 = vadd.xlane.f32.xlu0 %v118_v16 }
 0x173   :  { %v120_v22 = vpop.xlane.xlu0 %119 }
 0x174   :  { %v123_v23 = vadd.f32 %v122_v20, %v120_v22 }
 0x176   :  { %v130_v24 = vrot.slane %v123_v23, %v129_v21 }
 0x178   :  { %133 = vst.msk [vmem:[#allocation3] sm:$0x1] %vm132_vm3, %v130_v24 }
 0x179   :  { %188 = shalt.err (!%p185_p4)
}
 0x17a   :  { %s189_s4 = scalar_lea.hbm %s276_s5, 16 }
 0x17b   :  { %p190_p5 = scmp.ne.s32.totalorder %s276_s5, %s189_s4  ;;  %p193_p6 = scmp.lt.u32.totalorder %s189_s4, %s276_s5 }
 0x17d   :  { %p195_p7 = pnand %p193_p6, %p190_p5 }
 0x17f   :  { %198 = shalt.err (!%p195_p7)
}
 0x180   :  { %143 = dma.vmem_to_hbm [thread:$0]  %s141_s7, 16, %s276_s5, [#allocation4]  }
 0x181   :  { %199 = dma.done.wait [#allocation4], 16  }
 0x182   :  { %200 = vsyncadd [#allocation4], 4294967280 }
 0x183   :  { %147 = vsyncpa [#allocation4], 1 }

</bundles_post_ra>
